<compile_context>
chip_gen: v5e
topology: v5e:2x2
jax: 0.10.0
libtpu: 0.0.40
codegen_flags: <defaults>
</compile_context>

<pallas_src>
import math
import jax
import jax.numpy as jnp
from jax import lax
from jax.experimental import pallas as pl
from jax.experimental.pallas import tpu as pltpu

LN_EPS = 1e-5  # torch.nn.LayerNorm default


def _layernorm(x, eps=LN_EPS):
    mu = jnp.mean(x, axis=-1, keepdims=True)
    var = jnp.mean(jnp.square(x - mu), axis=-1, keepdims=True)
    return (x - mu) * lax.rsqrt(var + eps)


def _silu(x):
    return x * jax.nn.sigmoid(x)


# --------------------- standalone SinusoidalPosEmb kernel (the spec module) ---------------------

def sinusoidal_pos_emb_kernel(t_ref, o_ref):
    B, dim = o_ref.shape
    half = dim // 2
    lane = lax.broadcasted_iota(jnp.int32, (B, dim), 1)
    freq_idx = jnp.where(lane < half, lane, lane - half).astype(jnp.float32)
    emb_scale = math.log(10000.0) / max(half - 1, 1)
    ang = t_ref[...] * jnp.exp(freq_idx * (-emb_scale))            # (B,1)*(B,dim)
    o_ref[...] = jnp.where(lane < half, jnp.sin(ang), jnp.cos(ang))


def sinusoidal_pos_emb(t, dim):
    assert dim % 2 == 0, "SinusoidalPosEmb requires an even dim"
    B = t.shape[0]
    return pl.pallas_call(
        sinusoidal_pos_emb_kernel,
        out_shape=jax.ShapeDtypeStruct((B, dim), jnp.float32),
        grid=(1,),
        in_specs=[pl.BlockSpec((B, 1), lambda i: (0, 0))],
        out_specs=pl.BlockSpec((B, dim), lambda i: (0, 0)),
    )(t.astype(jnp.float32).reshape(B, 1))


# ----------------------------- fused decoder kernel -----------------------------

def fused_diffts_kernel(t_ref, x_ref, emb_w_ref, emb_b_ref, pe_ref,
                        ada_w_ref, ada_b_ref, proj_w_ref, proj_b_ref,
                        w1_ref, b1_ref, w2_ref, b2_ref, ln_w_ref, ln_b_ref,
                        out_w_ref, out_b_ref, o_ref, h_ref, st_ref):
    # grid = (batch_block, layer); one layer of one TB-sized batch block per step.
    l = pl.program_id(1)
    n_layers = pl.num_programs(1)
    TB, E = st_ref.shape
    S = proj_w_ref.shape[0]
    half = E // 2

    @pl.when(l == 0)
    def _init():
        # ---- SinusoidalPosEmb.forward (f32, computed once per batch block) ----
        lane = lax.broadcasted_iota(jnp.int32, (TB, E), 1)
        freq_idx = jnp.where(lane < half, lane, lane - half).astype(jnp.float32)
        emb_scale = math.log(10000.0) / max(half - 1, 1)
        ang = t_ref[...] * jnp.exp(freq_idx * (-emb_scale))        # (TB,1)*(TB,E)
        temb = jnp.where(lane < half, jnp.sin(ang), jnp.cos(ang))
        st_ref[...] = _silu(temb)                                  # reused by all layers
        # ---- input embedding + learned positional embedding (M = TB*S MXU rows) ----
        h_ref[...] = (jnp.dot(x_ref[...].astype(jnp.bfloat16), emb_w_ref[...],
                              preferred_element_type=jnp.float32)
                      + emb_b_ref[...] + pe_ref[...])

    # ---- this layer's residual AdaLN / seq-proj / MLP block ----
    ada = (jnp.dot(st_ref[...].astype(jnp.bfloat16), ada_w_ref[...],
                   preferred_element_type=jnp.float32) + ada_b_ref[...])   # (TB, 2E)
    scale = ada[:, :E]
    shift = ada[:, E:]

    h = h_ref[...]                                                 # (TB*S, E) f32
    pw = proj_w_ref[...]                                           # (S, S) bf16
    pb = proj_b_ref[...]                                           # (S, 1) f32
    x1_parts, x2_parts = [], []
    for i in range(TB):  # seq-axis Linear + AdaLN modulation are per batch element
        hi = h[i * S:(i + 1) * S, :]
        x1_i = _layernorm(hi) * (1.0 + scale[i:i + 1, :]) + shift[i:i + 1, :]
        x2_i = jnp.maximum(
            jnp.dot(pw, x1_i.astype(jnp.bfloat16),
                    preferred_element_type=jnp.float32) + pb, 0.0)
        x1_parts.append(x1_i)
        x2_parts.append(x2_i)
    x1 = jnp.concatenate(x1_parts, axis=0)                         # (TB*S, E)
    x2 = jnp.concatenate(x2_parts, axis=0)

    hm = _silu(jnp.dot(x2.astype(jnp.bfloat16), w1_ref[...],
                       preferred_element_type=jnp.float32) + b1_ref[...])  # (TB*S, 4E)
    x3 = jnp.dot(hm.astype(jnp.bfloat16), w2_ref[...],
                 preferred_element_type=jnp.float32) + b2_ref[...]
    h_new = _layernorm(x3 + x1) * ln_w_ref[...] + ln_b_ref[...]
    h_ref[...] = h_new

    @pl.when(l == n_layers - 1)
    def _finalize():
        # lane-padded output -> unmasked, lane-dense store
        o_ref[...] = (jnp.dot(h_new.astype(jnp.bfloat16), out_w_ref[...],
                              preferred_element_type=jnp.float32) + out_b_ref[...])


# ----------------------------- wrapper -----------------------------

def diffts_forward(params, x, t, tb=None):
    B, S, F = x.shape
    E = params["emb_w"].shape[1]
    L = params["ada_w"].shape[0]
    assert E % 2 == 0, "SinusoidalPosEmb requires an even embedding dim"

    # Batch-fold factor: target ~256 MXU rows per step (128 already saturates v5e);
    # keep B % tb == 0.  (For v7x, prefer B/tb even so both TensorCores get work.)
    if tb is None:
        tb = max(1, min(B, 256 // max(S, 1)))
    while B % tb != 0:
        tb -= 1
    nb = B // tb
    Fp = ((F + 127) // 128) * 128                                  # lane-dense output width

    out_w_p = jnp.zeros((E, Fp), jnp.bfloat16).at[:, :F].set(params["out_w"])
    out_b_p = jnp.zeros((1, Fp), jnp.float32).at[:, :F].set(params["out_b"])
    pe_t = jnp.tile(params["pe"], (tb, 1))                         # (tb*S, E)
    x_blk = x.astype(jnp.float32).reshape(nb, tb * S, F)           # batch folded wrapper-side
    t_col = t.astype(jnp.float32).reshape(B, 1)

    batch3 = lambda b, l: (b, 0, 0)
    layer3 = lambda b, l: (l, 0, 0)
    const2 = lambda b, l: (0, 0)

    # VMEM budget from the real block footprint (double-buffered) + headroom.
    per_layer = 2 * (E * 2 * E + S * S + E * 4 * E + 4 * E * E)            # bf16 weights
    per_layer += 4 * (2 * E + S + 4 * E + 3 * E)                           # f32 biases / ln
    resident = 2 * (F * E + E * Fp) + 4 * (E + tb * S * E + Fp)            # emb/out/pe/biases
    io = 4 * (tb * S * F + tb * S * Fp + tb)
    scratch = 4 * (tb * S * E + tb * E)
    est = 2 * (per_layer + resident + io) + scratch
    vmem_limit = int(min(100 * 2**20, max(32 * 2**20, 2 * est + 4 * 2**20)))

    # advisory cost estimate so XLA schedules around the custom call
    flops = (2 * B * S * (F * E + E * Fp)
             + 2 * B * L * (E * 2 * E + S * S * E + 2 * S * E * 4 * E))
    transcendentals = B * 2 * E + B * L * (2 * E + S * 4 * E)
    param_bytes = sum(int(v.size) * v.dtype.itemsize
                      for v in jax.tree_util.tree_leaves(params))
    bytes_accessed = nb * param_bytes + 4 * (x.size + B + B * S * Fp)

    out_p = pl.pallas_call(
        fused_diffts_kernel,
        out_shape=jax.ShapeDtypeStruct((nb, tb * S, Fp), jnp.float32),
        grid=(nb, L),
        in_specs=[
            pl.BlockSpec((tb, 1), lambda b, l: (b, 0)),            # t     (layer-constant)
            pl.BlockSpec((None, tb * S, F), batch3),               # x     (layer-constant)
            pl.BlockSpec((F, E), const2),                          # emb_w (fetched once)
            pl.BlockSpec((1, E), const2),                          # emb_b
            pl.BlockSpec((tb * S, E), const2),                     # pe (pre-tiled over tb)
            pl.BlockSpec((None, E, 2 * E), layer3),                # ada_w  (streamed per layer)
            pl.BlockSpec((None, 1, 2 * E), layer3),                # ada_b
            pl.BlockSpec((None, S, S), layer3),                    # proj_w
            pl.BlockSpec((None, S, 1), layer3),                    # proj_b
            pl.BlockSpec((None, E, 4 * E), layer3),                # w1
            pl.BlockSpec((None, 1, 4 * E), layer3),                # b1
            pl.BlockSpec((None, 4 * E, E), layer3),                # w2
            pl.BlockSpec((None, 1, E), layer3),                    # b2
            pl.BlockSpec((None, 1, E), layer3),                    # ln_w
            pl.BlockSpec((None, 1, E), layer3),                    # ln_b
            pl.BlockSpec((E, Fp), const2),                         # out_w (lane-padded)
            pl.BlockSpec((1, Fp), const2),                         # out_b
        ],
        out_specs=pl.BlockSpec((None, tb * S, Fp), batch3),
        scratch_shapes=[pltpu.VMEM((tb * S, E), jnp.float32),      # resident h
                        pltpu.VMEM((tb, E), jnp.float32)],         # silu(SinusoidalPosEmb(t))
        compiler_params=pltpu.CompilerParams(
            dimension_semantics=("parallel", "arbitrary"),
            vmem_limit_bytes=vmem_limit),
        cost_estimate=pl.CostEstimate(flops=flops,
                                      transcendentals=transcendentals,
                                      bytes_accessed=bytes_accessed),
    )(t_col, x_blk, params["emb_w"], params["emb_b"], pe_t,
      params["ada_w"], params["ada_b"], params["proj_w"], params["proj_b"],
      params["w1"], params["b1"], params["w2"], params["b2"],
      params["ln_w"], params["ln_b"], out_w_p, out_b_p)

    return out_p.reshape(B, S, Fp)[..., :F]


# ----------------------------- params + pure-JAX reference -----------------------------

def init_params(key, n_feat, seq_len, n_embd, n_layer):
    keys = jax.random.split(key, 8)

    def w(k, shape, scale=0.02):       # matmul weights stored bf16 (MXU dtype)
        return (scale * jax.random.normal(k, shape, jnp.float32)).astype(jnp.bfloat16)

    return {
        "emb_w": w(keys[0], (n_feat, n_embd)),
        "emb_b": jnp.zeros((1, n_embd), jnp.float32),
        "pe": jax.random.uniform(keys[1], (seq_len, n_embd), jnp.float32, -0.02, 0.02),
        "out_w": w(keys[2], (n_embd, n_feat)),
        "out_b": jnp.zeros((1, n_feat), jnp.float32),
        # per-layer weights stacked along a leading L axis (streamed layer-by-layer)
        "ada_w": w(keys[3], (n_layer, n_embd, 2 * n_embd)),
        "ada_b": jnp.zeros((n_layer, 1, 2 * n_embd), jnp.float32),
        "proj_w": w(keys[4], (n_layer, seq_len, seq_len)),
        "proj_b": 0.01 * jnp.ones((n_layer, seq_len, 1), jnp.float32),
        "w1": w(keys[5], (n_layer, n_embd, 4 * n_embd)),
        "b1": jnp.zeros((n_layer, 1, 4 * n_embd), jnp.float32),
        "w2": w(keys[6], (n_layer, 4 * n_embd, n_embd)),
        "b2": jnp.zeros((n_layer, 1, n_embd), jnp.float32),
        "ln_w": jnp.ones((n_layer, 1, n_embd), jnp.float32),
        "ln_b": jnp.zeros((n_layer, 1, n_embd), jnp.float32),
    }


def sinusoidal_pos_emb_ref(t, dim):
    half = dim // 2
    emb_scale = math.log(10000.0) / max(half - 1, 1)
    freqs = jnp.exp(jnp.arange(half, dtype=jnp.float32) * -emb_scale)
    ang = t[:, None].astype(jnp.float32) * freqs[None, :]
    return jnp.concatenate([jnp.sin(ang), jnp.cos(ang)], axis=-1)


def reference_forward(params, x, t):
    """Pure-JAX reference using the same mixed precision as the kernel: bf16 matmul
    inputs with f32 accumulation; LayerNorm stats and SinusoidalPosEmb stay f32."""
    E = params["emb_w"].shape[1]
    L = params["ada_w"].shape[0]
    mm = lambda sub, a, b: jnp.einsum(sub, a.astype(jnp.bfloat16), b.astype(jnp.bfloat16),
                                      preferred_element_type=jnp.float32)
    h = mm('bsf,fe->bse', x, params["emb_w"]) + params["emb_b"] + params["pe"][None]
    st = _silu(sinusoidal_pos_emb_ref(t, E))
    for l in range(L):
        ada = mm('be,ec->bc', st, params["ada_w"][l]) + params["ada_b"][l]
        scale, shift = ada[:, None, :E], ada[:, None, E:]
        x1 = _layernorm(h) * (1.0 + scale) + shift
        x2 = jnp.maximum(mm('st,bte->bse', params["proj_w"][l], x1)
                         + params["proj_b"][l][None], 0.0)
        hm = _silu(mm('bsk,kc->bsc', x2, params["w1"][l]) + params["b1"][l])
        x3 = mm('bsc,ce->bse', hm, params["w2"][l]) + params["b2"][l]
        h = _layernorm(x3 + x1) * params["ln_w"][l] + params["ln_b"][l]
    return mm('bse,ef->bsf', h, params["out_w"]) + params["out_b"]


if __name__ == "__main__":
    B, S, F, E, L = 2, 8, 4, 32, 3   # batch, seq_len, n_feat, n_embd, n_layer_dec
    key = jax.random.PRNGKey(0)
    kx, kt, kp = jax.random.split(key, 3)
    x = jax.random.normal(kx, (B, S, F), jnp.float32)
    t = jax.random.uniform(kt, (B,), jnp.float32, 0.0, 1000.0)   # diffusion timesteps
    params = init_params(kp, F, S, E, L)

    # 1) the spec module itself: SinusoidalPosEmb kernel vs reference (pure f32)
    pe_out = jax.block_until_ready(sinusoidal_pos_emb(t, E))
    pe_ref = sinusoidal_pos_emb_ref(t, E)
    assert pe_out.shape == (B, E)
    assert jnp.allclose(pe_out, pe_ref, atol=5e-4, rtol=5e-4), "SinusoidalPosEmb mismatch"

    # 2) fused decoder forward (uses SinusoidalPosEmb in-kernel)
    out = jax.block_until_ready(diffts_forward(params, x, t))
    ref = reference_forward(params, x, t)
    assert out.shape == (B, S, F)
    assert jnp.allclose(out, ref, atol=5e-3, rtol=5e-3), "Pallas output mismatch vs reference"
    print("KERNEL_OK")
</pallas_src>

<mosaic_0001>
module attributes {stable_mosaic.version = 11 : i64} {
  func.func @sinusoidal_pos_emb_kernel(%arg0: i32, %arg1: memref<2x1xf32, #tpu.memory_space<vmem>>, %arg2: memref<2x32xf32, #tpu.memory_space<vmem>>) attributes {dimension_semantics = [#tpu.dimension_semantics<arbitrary>], iteration_bounds = array<i64: 1>, scalar_prefetch = 0 : i64, scratch_operands = 0 : i64, tpu.core_type = #tpu.core_type<tc>, window_params = [{pipeline_mode = #tpu.pipeline_mode<synchronous>, transform_indices = @transform_0, window_bounds = array<i64: 2, 1>}, {pipeline_mode = #tpu.pipeline_mode<synchronous>, transform_indices = @transform_1, window_bounds = array<i64: 2, 32>}]} {
    %0 = tpu.iota {dimensions = array<i32: 1>} : vector<2x32xi32>
    %c16_i32 = arith.constant 16 : i32
    %1 = vector.broadcast %c16_i32 : i32 to vector<2x32xi32>
    %2 = arith.cmpi slt, %0, %1 : vector<2x32xi32>
    %c16_i32_0 = arith.constant 16 : i32
    %3 = vector.broadcast %c16_i32_0 : i32 to vector<2x32xi32>
    %4 = arith.subi %0, %3 : vector<2x32xi32>
    %5 = arith.select %2, %0, %4 : vector<2x32xi1>, vector<2x32xi32>
    %6 = arith.sitofp %5 : vector<2x32xi32> to vector<2x32xf32>
    %c0 = arith.constant 0 : index
    %c0_1 = arith.constant 0 : index
    %7 = vector.load %arg1[%c0, %c0_1] : memref<2x1xf32, #tpu.memory_space<vmem>>, vector<2x1xf32>
    %cst = arith.constant -0.614022672 : f32
    %8 = vector.broadcast %cst : f32 to vector<2x32xf32>
    %9 = arith.mulf %6, %8 : vector<2x32xf32>
    %10 = math.exp %9 : vector<2x32xf32>
    %11 = vector.broadcast %7 : vector<2x1xf32> to vector<2x32xf32>
    %12 = arith.mulf %11, %10 : vector<2x32xf32>
    %c16_i32_2 = arith.constant 16 : i32
    %13 = vector.broadcast %c16_i32_2 : i32 to vector<2x32xi32>
    %14 = arith.cmpi slt, %0, %13 : vector<2x32xi32>
    %15 = math.sin %12 : vector<2x32xf32>
    %16 = math.cos %12 : vector<2x32xf32>
    %17 = arith.select %14, %15, %16 : vector<2x32xi1>, vector<2x32xf32>
    %c0_3 = arith.constant 0 : index
    %c0_4 = arith.constant 0 : index
    %18 = vector.load %arg2[%c0_3, %c0_4] : memref<2x32xf32, #tpu.memory_space<vmem>>, vector<2x32xf32>
    tpu.vector_store %arg2[%c0_3, %c0_4], %17 {strides = array<i32>} : memref<2x32xf32, #tpu.memory_space<vmem>>, vector<2x32xf32>,
    return
  }
  func.func @transform_0(%arg0: i32) -> (i32, i32) {
    %c0_i32 = arith.constant 0 : i32
    %c0_i32_0 = arith.constant 0 : i32
    %c0_i32_1 = arith.constant 0 : i32
    return %c0_i32, %c0_i32_0 : i32, i32
  }
  func.func @transform_1(%arg0: i32) -> (i32, i32) {
    %c0_i32 = arith.constant 0 : i32
    %c0_i32_0 = arith.constant 0 : i32
    %c0_i32_1 = arith.constant 0 : i32
    return %c0_i32, %c0_i32_0 : i32, i32
  }
}

</mosaic_0001>

<bundles_post_ra>
// kernel: tpu_custom_call.1
= control target key start
LH: loop header
LB: loop body
LE: loop exit
PB: predicated region body
PF: predicated region fallthrough
CT: control target
= control target key end

     0   :  { %v397_v1 = vmov 0   ;;  %s491_s0 = inlined_call_operand.vmem [shape: f32[2,1], index: 0, kind: input, shape index: {}]   ;;  %s492_s1 = inlined_call_operand.hbm [shape: f32[2,32], index: 1, kind: output, shape index: {}]  }
   0x1   :  { %v15_v0 = vld [vmem:[%s491_s0] sm:$0x3]  ;;  %368 = vset.pattern.permute.xlu0 %v397_v1 }
   0x2   :  { %21 = vperm.xlu0 %368, %v15_v0  }
   0x3   :  { %6 = vsyncpa [#allocation3], 0  ;;  %v9_v2 = vlaneseq  ;;  %v398_v23 = vmov 683565275   ;;  %v399_v25 = vmov 2475754826  }
   0x4   :  { %v400_v28 = vmov 2131351028   ;;  %v401_v31 = vmov 2102212464   ;;  %v402_v34 = vmov 920167782  }
   0x5   :  { %v419_v3 = vand.u32 127, %v9_v2  ;;  %v403_v37 = vmov 1326507024   ;;  %s404_s0 = smov [#allocation2]   ;;  %s344_s11 = sshll.u32 %s492_s1, 4  ;;  %s345_s11 = int_to_ptr.hbm [resolvable:$true] %s344_s11 }
   0x6   :  { %s342_s8 = sshll.u32 %s404_s0, 4  ;;  %s343_s8 = int_to_ptr.vmem [resolvable:$true] %s342_s8 }
   0x7   :  { %v353_v4 = vadd.s32 4294967280, %v419_v3  ;;  %vm11_vm0 = vcmp.lt.s32.totalorder %v419_v3, 16 }
   0x9   :  { %v13_v5 = vsel %vm11_vm0, %v419_v3, %v353_v4 }
   0xa   :  { %v14_v6 = vcvt.s32.f32 %v13_v5 }
   0xc   :  { %v16_v7 = vmul.f32 -0.6140227, %v14_v6 }
   0xe   :  { %v17_v8 = vmul.f32 1.442695, %v16_v7 }
  0x10   :  { %369 = vpow2.f32 %v17_v8 }
  0x16   :  { %v370_v9 = vpop.eup %369 }
  0x74   :  { %v22_v10 = vpop.permute.xlu0 %21 }
  0x75   :  { %v426_v11 = vmul.f32 %v370_v9, %v22_v10 }
  0x77   :  { %v28_v12 = vand.u32 2139095040, %v426_v11  ;;  %v25_v15 = vand.u32 2147483647, %v426_v11  ;;  %vm27_vm13 = vcmp.lt.s32.totalorder %v426_v11, 0 }
  0x79   :  { %v29_v13 = vshrl.u32 %v28_v12, 23  ;;  %v32_v17 = vand.u32 8388607, %v25_v15  ;;  %vm26_vm14 = vcmp.le.f32.partialorder %v25_v15, 0.7853982 }
  0x7b   :  { %v354_v14 = vadd.s32 4294967169, %v29_v13  ;;  %v33_v21 = vor.u32 8388608, %v32_v17 }
  0x7d   :  { %v35_v16 = vadd.s32 1, %v354_v14  ;;  %v443_v44 = vshll.u32 %v33_v21, 8 }
  0x7f   :  { %vm36_vm1 = vcmp.gt.s32.totalorder %v35_v16, 0  ;;  %v74_v53 = vand.u32 65535, %v443_v44  ;;  %v75_v54 = vshrl.u32 %v443_v44, 16 }
  0x80   :  { %v37_v18 = vsel %vm36_vm1, %v35_v16, 0 }
  0x81   :  { %v39_v19 = vand.u32 31, %v37_v18  ;;  %v434_v22 = vshrl.u32 %v37_v18, 5 }
  0x83   :  { %v432_v20 = vsub.s32 32, %v39_v19  ;;  %v42_v24 = vshll.u32 %v398_v23, %v39_v19  ;;  %v45_v26 = vshll.u32 %v399_v25, %v39_v19  ;;  %v48_v30 = vshll.u32 %v400_v28, %v39_v19 }
  0x84   :  { %v51_v33 = vshll.u32 %v401_v31, %v39_v19  ;;  %v54_v36 = vshll.u32 %v402_v34, %v39_v19  ;;  %vm57_vm2 = vcmp.lt.s32.totalorder %v434_v22, 1  ;;  %vm60_vm3 = vcmp.lt.s32.totalorder %v434_v22, 4 }
  0x85   :  { %v43_v27 = vshrl.u32 %v399_v25, %v432_v20  ;;  %v46_v29 = vshrl.u32 %v400_v28, %v432_v20  ;;  %v49_v32 = vshrl.u32 %v401_v31, %v432_v20  ;;  %v52_v35 = vshrl.u32 %v402_v34, %v432_v20 }
  0x86   :  { %v55_v38 = vshrl.u32 %v403_v37, %v432_v20  ;;  %vm59_vm4 = vcmp.lt.s32.totalorder %v434_v22, 3  ;;  %vm58_vm5 = vcmp.lt.s32.totalorder %v434_v22, 2  ;;  %v41_v19 = vshrl.u32 %v398_v23, %v432_v20 }
  0x87   :  { %v44_v39 = vor.u32 %v43_v27, %v42_v24  ;;  %v47_v40 = vor.u32 %v46_v29, %v45_v26  ;;  %v50_v41 = vor.u32 %v49_v32, %v48_v30  ;;  %v53_v42 = vor.u32 %v52_v35, %v51_v33 }
  0x88   :  { %v56_v43 = vor.u32 %v55_v38, %v54_v36 }
  0x89   :  { %v65_v45 = vsel %vm57_vm2, %v44_v39, %v47_v40  ;;  %v69_v46 = vsel %vm57_vm2, %v47_v40, %v50_v41  ;;  %v66_v47 = vsel %vm60_vm3, %v53_v42, 920167782  ;;  %v62_v16 = vsel %vm60_vm3, %v50_v41, 2102212464 }
  0x8a   :  { %v70_v48 = vsel %vm60_vm3, %v56_v43, 1326507024  ;;  %v67_v49 = vsel %vm59_vm4, %v50_v41, %v66_v47  ;;  %v61_v28 = vsel %vm57_vm2, %v41_v19, %v44_v39  ;;  %v63_v29 = vsel %vm59_vm4, %v47_v40, %v62_v16 }
  0x8b   :  { %v71_v50 = vsel %vm59_vm4, %v53_v42, %v70_v48  ;;  %v68_v51 = vsel %vm58_vm5, %v65_v45, %v67_v49  ;;  %v64_v20 = vsel %vm58_vm5, %v61_v28, %v63_v29 }
  0x8c   :  { %v72_v52 = vsel %vm58_vm5, %v69_v46, %v71_v50  ;;  %v98_v57 = vand.u32 65535, %v68_v51  ;;  %v99_v58 = vshrl.u32 %v68_v51, 16  ;;  %v118_v36 = vmul.u32 %v443_v44, %v64_v20 }
  0x8d   :  { %v76_v55 = vand.u32 65535, %v72_v52  ;;  %v77_v56 = vshrl.u32 %v72_v52, 16 }
  0x8e   :  { %v101_v61 = vmul.u32 %v99_v58, %v74_v53  ;;  %v102_v62 = vmul.u32 %v98_v57, %v75_v54  ;;  %v100_v4 = vmul.u32 %v98_v57, %v74_v53  ;;  %v103_v8 = vmul.u32 %v99_v58, %v75_v54 }
  0x8f   :  { %v79_v59 = vmul.u32 %v77_v56, %v74_v53  ;;  %v80_v60 = vmul.u32 %v76_v55, %v75_v54  ;;  %v78_v63 = vmul.u32 %v76_v55, %v74_v53  ;;  %v81_v2 = vmul.u32 %v77_v56, %v75_v54 }
  0x90   :  { %v104_v5 = vshll.u32 %v101_v61, 16  ;;  %v106_v10 = vshll.u32 %v102_v62, 16  ;;  %v105_v26 = vshrl.u32 %v101_v61, 16  ;;  %v107_v32 = vshrl.u32 %v102_v62, 16 }
  0x91   :  { %v82_v0 = vshll.u32 %v79_v59, 16  ;;  %v84_v6 = vshll.u32 %v80_v60, 16  ;;  %v83_v21 = vshrl.u32 %v79_v59, 16  ;;  %v85_v30 = vshrl.u32 %v80_v60, 16 }
  0x92   :  { %vm108_vm7 = vc.u32 %v100_v4, %v104_v5  ;;  %v110_v12 = vadd.s32 %v104_v5, %v100_v4 }
  0x93   :  { %vm86_vm6 = vc.u32 %v78_v63, %v82_v0  ;;  %v88_v7 = vadd.s32 %v82_v0, %v78_v63  ;;  %v109_v14 = vsel %vm108_vm7, 1, %v397_v1  ;;  %vm335_vm7 = vcmask 254976  }
  0x94   :  { %v87_v9 = vsel %vm86_vm6, 1, %v397_v1  ;;  %v111_v18 = vadd.s32 %v109_v14, %v103_v8  ;;  %vm112_vm9 = vc.u32 %v110_v12, %v106_v10  ;;  %v114_v35 = vadd.s32 %v110_v12, %v106_v10 }
  0x95   :  { %v89_v13 = vadd.s32 %v87_v9, %v81_v2  ;;  %vm90_vm8 = vc.u32 %v88_v7, %v84_v6  ;;  %v113_v25 = vsel %vm112_vm9, 1, %v397_v1  ;;  %vm168_vm6 = vweird.f32 %v426_v11 }
  0x96   :  { %v91_v17 = vsel %vm90_vm8, 1, %v397_v1  ;;  %v115_v27 = vadd.s32 %v113_v25, %v111_v18 }
  0x97   :  { %v93_v24 = vadd.s32 %v91_v17, %v89_v13 }
  0x98   :  { %v116_v33 = vadd.s32 %v115_v27, %v105_v26 }
  0x99   :  { %v94_v31 = vadd.s32 %v93_v24, %v83_v21 }
  0x9a   :  { %v117_v23 = vadd.s32 %v116_v33, %v107_v32 }
  0x9b   :  { %v95_v34 = vadd.s32 %v94_v31, %v85_v30 }
  0x9c   :  { %v121_v1 = vadd.s32 1, %v117_v23 }
  0x9d   :  { %vm120_vm10 = vc.u32 %v95_v34, %v114_v35  ;;  %v119_v22 = vadd.s32 %v114_v35, %v95_v34 }
  0x9e   :  { %v122_v37 = vsel %vm120_vm10, %v121_v1, %v117_v23 }
  0x9f   :  { %v123_v38 = vadd.s32 %v122_v37, %v118_v36 }
  0xa1   :  { %v124_v39 = vadd.s32 536870912, %v123_v38 }
  0xa3   :  { %v125_v41 = vshrl.u32 %v124_v39, 30 }
  0xa5   :  { %v126_v42 = vshll.u32 %v125_v41, 30  ;;  %v149_v61 = vsub.s32 4, %v125_v41 }
  0xa7   :  { %v127_v40 = vsub.s32 %v123_v38, %v126_v42  ;;  %v150_v4 = vsel %vm27_vm13, %v149_v61, %v125_v41 }
  0xa8   :  { %v152_v8 = vsel %vm26_vm14, 0, %v150_v4 }
  0xa9   :  { %vm128_vm11 = vcmp.lt.s32.totalorder %v127_v40, 0  ;;  %v129_v43 = vsub.s32 0, %v127_v40  ;;  %v169_v13 = vadd.s32 3, %v152_v8  ;;  %v324_v18 = vand.u32 3, %v152_v8 }
  0xab   :  { %v130_v45 = vsel %vm128_vm11, %v129_v43, %v127_v40  ;;  %v170_v19 = vand.u32 3, %v169_v13  ;;  %vm325_vm15 = vcmp.lt.s32.totalorder %v324_v18, 2  ;;  %vm326_vm1 = vcmp.eq.s32.totalorder %v324_v18, 0 }
  0xac   :  { %v131_v46 = vclz %v130_v45  ;;  %vm329_vm5 = vcmp.eq.s32.totalorder %v324_v18, 2 }
  0xad   :  { %vm171_vm2 = vcmp.lt.s32.totalorder %v170_v19, 2  ;;  %vm172_vm3 = vcmp.eq.s32.totalorder %v170_v19, 0  ;;  %vm175_vm4 = vcmp.eq.s32.totalorder %v170_v19, 2 }
  0xae   :  { %v355_v47 = vadd.s32 4294967294, %v131_v46 }
  0xb0   :  { %vm356_vm12 = vcmp.lt.s32.totalorder %v355_v47, 0 }
  0xb1   :  { %v134_v48 = vsel %vm356_vm12, 0, %v355_v47 }
  0xb2   :  { %v135_v49 = vsub.s32 32, %v134_v48  ;;  %v139_v50 = vsub.s32 4294967266, %v134_v48  ;;  %v136_v51 = vshll.u32 %v127_v40, %v134_v48 }
  0xb4   :  { %v137_v52 = vshrl.u32 %v119_v22, %v135_v49  ;;  %v140_v53 = vadd.s32 127, %v139_v50 }
  0xb6   :  { %v138_v44 = vor.u32 %v137_v52, %v136_v51  ;;  %v141_v54 = vshll.u32 %v140_v53, 23 }
  0xb8   :  { %v142_v55 = vor.u32 4788187, %v141_v54  ;;  %v145_v57 = vcvt.s32.f32 %v138_v44 }
  0xba   :  { %v143_v56 = vand.u32 2147483647, %v142_v55 }
  0xbc   :  { %v146_v58 = vmul.f32 %v145_v57, %v143_v56 }
  0xbe   :  { %v147_v59 = vxor.u32 2147483648, %v146_v58 }
  0xc0   :  { %v148_v60 = vsel %vm27_vm13, %v147_v59, %v146_v58 }
  0xc1   :  { %v151_v62 = vsel %vm26_vm14, %v426_v11, %v148_v60 }
  0xc2   :  { %v153_v63 = vmul.f32 %v151_v62, %v151_v62 }
  0xc4   :  { %v161_v0 = vmul.f32 -0.00019511016, %v153_v63  ;;  %v154_v2 = vmul.f32 -0.001358992, %v153_v63 }
  0xc6   :  { %v162_v5 = vadd.f32 0.008332121, %v161_v0  ;;  %v155_v6 = vadd.f32 0.041655596, %v154_v2 }
  0xc8   :  { %v163_v7 = vmul.f32 %v162_v5, %v153_v63  ;;  %v156_v9 = vmul.f32 %v155_v6, %v153_v63 }
  0xca   :  { %v164_v10 = vadd.f32 -0.16666654, %v163_v7  ;;  %v157_v12 = vadd.f32 -0.4999988, %v156_v9 }
  0xcc   :  { %v165_v14 = vmul.f32 %v164_v10, %v153_v63  ;;  %v158_v16 = vmul.f32 %v157_v12, %v153_v63 }
  0xce   :  { %v166_v17 = vadd.f32 1.0, %v165_v14  ;;  %v159_v15 = vadd.f32 1.0, %v158_v16 }
  0xd0   :  { %v167_v21 = vmul.f32 %v166_v17, %v151_v62  ;;  %v176_v24 = vxor.u32 2147483648, %v159_v15 }
  0xd2   :  { %v173_v25 = vxor.u32 2147483648, %v167_v21  ;;  %v177_v27 = vsel %vm175_vm4, %v176_v24, %v167_v21  ;;  %v331_v29 = vsel %vm329_vm5, %v176_v24, %v167_v21 }
  0xd4   :  { %v174_v26 = vsel %vm172_vm3, %v159_v15, %v173_v25  ;;  %v328_v28 = vsel %vm326_vm1, %v159_v15, %v173_v25 }
  0xd5   :  { %v178_v30 = vsel %vm171_vm2, %v174_v26, %v177_v27  ;;  %v332_v31 = vsel %vm325_vm15, %v328_v28, %v331_v29 }
  0xd6   :  { %v179_v32 = vsel %vm168_vm6, nan, %v178_v30  ;;  %v333_v33 = vsel %vm168_vm6, nan, %v332_v31 }
  0xd7   :  { %v334_v34 = vsel %vm11_vm0, %v179_v32, %v333_v33 }
  0xd8   :  { %336 = vst.msk [vmem:[#allocation2] sm:$0x3] %vm335_vm7, %v334_v34 }
  0xd9   :  { %347 = dma.vmem_to_hbm [thread:$0]  %s343_s8, 32, %s345_s11, [#allocation3]  }
  0xda   :  { %395 = dma.done.wait [#allocation3], 32  }
  0xdb   :  { %396 = vsyncadd [#allocation3], 4294967264 }
  0xdc   :  { %352 = vsyncpa [#allocation3], 1 }

</bundles_post_ra>
